<compile_context>
chip_gen: v5e
topology: v5e:2x2
jax: 0.10.0
libtpu: 0.0.40
codegen_flags: <defaults>
</compile_context>

<pallas_src>
import functools
import math

import jax
import jax.numpy as jnp
from jax import lax
from jax.experimental import pallas as pl
from jax.experimental.pallas import tpu as pltpu


def autopad(k, p=None):
    if p is None:
        p = k // 2 if isinstance(k, int) else [x // 2 for x in k]
    return p


# ---------------------------------------------------------------------------
# Per-generation VMEM budgeting.
# ---------------------------------------------------------------------------
def _vmem_capacity_bytes():
    try:
        cap = int(pltpu.get_tpu_info().vmem_capacity_bytes)
        if cap > 0:
            return cap
    except Exception:
        pass
    return 64 * 1024 * 1024  # conservative fallback (v7x-sized)


def _vmem_plan():
    cap = _vmem_capacity_bytes()
    # ~48 MiB scoped limit on v7x (64 MiB physical); ~96 MiB on v5e/v6e (128 MiB).
    limit = min((cap * 3) // 4, 96 * 1024 * 1024)
    budget = limit // 2  # data working-set target; leaves pipeline/compiler headroom
    return limit, budget


def _round_up(a, m):
    return -(-a // m) * m


# ---------------------------------------------------------------------------
# In-kernel Mish:  y * tanh(softplus(y)) = y * u/(u+2),  u = t*(t+2), t = e^y.
# Clamp at 20 matches torch's softplus threshold (exact in f32 there).
# ---------------------------------------------------------------------------
def _mish(y, approx_recip):
    t = jnp.exp(jnp.minimum(y, 20.0))
    u = t * (t + 2.0)
    d = u + 2.0
    if approx_recip:
        # MXU-bound regime: put the divide on the otherwise-idle EUP slot.
        return y * (u * pl.reciprocal(d, approx=True))
    # EUP-bound regime (small contraction depth): keep the exact VPU divide.
    return y * (u / d)


# ---------------------------------------------------------------------------
# Kernels
# ---------------------------------------------------------------------------
def _convsqu_1x1_kernel(x_ref, w_ref, o_ref, *, act, approx_recip):
    """Fused 1x1 conv + Mish on one (batch, lane-tile).

    x_ref : (1, C1, T)  flattened NCHW input tile (T lanes of H*W)
    w_ref : (C2, C1)    bf16 weights
    o_ref : (1, C2, T)  lane-dense output tile
    """
    x = x_ref[0].astype(jnp.bfloat16)  # MXU is bf16-native; DEFAULT f32 truncates anyway
    acc = jnp.dot(w_ref[...], x, preferred_element_type=jnp.float32)
    if act:
        acc = _mish(acc, approx_recip)
    o_ref[0] = acc.astype(o_ref.dtype)


def _convsqu_kxk_kernel(x_ref, w_ref, o_ref, *, k, p, W, act, approx_recip):
    """Fused odd-k 'same' conv (stride 1) + Mish on one (batch, row-tile).

    x_ref : (1, k, C1, T)  k dy-shifted row tiles, T = R*W lanes, bf16
    w_ref : (k, C2, k*C1)  per-dy weights with dx folded into the contraction, bf16
    o_ref : (1, C2, T)     lane-dense output tile
    """
    C2 = o_ref.shape[1]
    T = x_ref.shape[3]
    col = lax.broadcasted_iota(jnp.int32, (1, T), 1) % W
    acc = jnp.zeros((C2, T), jnp.float32)
    for dy in range(k):
        xt = x_ref[0, dy]  # (C1, T); dy halo already resolved in HBM
        parts = []
        for dx in range(k):
            off = dx - p
            xs = xt if off == 0 else pltpu.roll(xt, shift=(-off) % T, axis=1)
            valid = (col + off >= 0) & (col + off < W)
            parts.append(jnp.where(valid, xs, jnp.zeros((), xs.dtype)))
        # Fold dx into the contraction dim -> deeper K for better MXU cadence.
        xstack = jnp.concatenate(parts, axis=0)  # (k*C1, T)
        acc = acc + jnp.dot(w_ref[dy], xstack, preferred_element_type=jnp.float32)
    if act:
        acc = _mish(acc, approx_recip)
    o_ref[0] = acc.astype(o_ref.dtype)


# ---------------------------------------------------------------------------
# Wrapper
# ---------------------------------------------------------------------------
def convsqu_forward(x_nchw, weight, *, k=1, s=1, p=None, g=1, act=True):
    """ConvSqu.forward.  x_nchw: (N, C1, H, W); weight: PyTorch (C2, C1, k, k)."""
    if p is None:
        p = autopad(k)
    if g != 1:
        raise NotImplementedError("groups > 1")  # TODO(synk): grouped conv not implemented (module default g=1)
    N, C1, H, W = x_nchw.shape
    C2, C1w, kh, kw = weight.shape
    assert C1w == C1 and kh == k and kw == k

    vmem_limit, budget = _vmem_plan()
    out_dtype = x_nchw.dtype
    ob = jnp.dtype(out_dtype).itemsize

    if k == 1:
        if p != 0:
            raise NotImplementedError("k=1 with p>0")  # autopad(1)=0 is the module behavior
        # TODO(synk): for s>1 a strided in-kernel read would avoid this extra HBM pass (rare config).
        xs = x_nchw[:, :, ::s, ::s] if s != 1 else x_nchw
        Ho, Wo = xs.shape[2], xs.shape[3]
        L = Ho * Wo
        x2 = xs.reshape(N, C1, L)  # free reshape, no transpose
        w2 = weight.reshape(C2, C1).astype(jnp.bfloat16)
        xb = jnp.dtype(x2.dtype).itemsize

        # VMEM-budget-driven lane tile: double-buffered in/out blocks + bf16 cast + f32 acc.
        per_lane = 2 * C1 * xb + 2 * C2 * ob + C1 * 2 + C2 * 4
        T = max(128, (budget // per_lane) // 128 * 128)
        T = min(T, _round_up(L, 128))
        grid = (N, pl.cdiv(L, T))  # partial final tile handled by masked stores

        kernel = functools.partial(_convsqu_1x1_kernel, act=act,
                                   approx_recip=(C1 >= 256))
        # TODO(synk): on v5e, pipeline_mode=pl.Buffered(3) on the x spec can hide residual DMA.
        out2 = pl.pallas_call(
            kernel,
            out_shape=jax.ShapeDtypeStruct((N, C2, L), out_dtype),
            grid=grid,
            in_specs=[
                pl.BlockSpec((1, C1, T), lambda n, j: (n, 0, j)),
                pl.BlockSpec((C2, C1), lambda n, j: (0, 0)),
            ],
            out_specs=pl.BlockSpec((1, C2, T), lambda n, j: (n, 0, j)),
            compiler_params=pltpu.CompilerParams(
                dimension_semantics=("parallel", "parallel"),
                vmem_limit_bytes=vmem_limit),
        )(x2, w2)
        return out2.reshape(N, C2, Ho, Wo)

    # ---- general odd-k, stride-1, 'same' padding path (row-tiled with halo) ----
    if k % 2 == 0 or p != k // 2 or s != 1:
        raise NotImplementedError("k>1 supports odd k, 'same' pad, s=1")  # TODO(synk): strided / even-k spatial conv
    L = H * W

    # Rows per tile R: multiple of q keeps the output lane tile (R*W) 128-aligned;
    # magnitude derived from the per-generation VMEM budget, not a fixed target.
    q = 128 // math.gcd(W, 128)
    xb = 2  # dy-shifted activation copies are stored/streamed as bf16
    per_lane = 2 * k * C1 * xb + 2 * C2 * ob + k * C1 * 2 + C2 * 4
    R = max(q, (budget // (per_lane * W)) // q * q)
    R = min(R, _round_up(H, q))
    Ht = pl.cdiv(H, R)
    Hp = Ht * R

    # Row-pad once and build k dy-shifted bf16 copies: the vertical halo is resolved
    # in HBM, so every grid step reads a plain blocked, double-buffered row tile
    # (no whole-image VMEM block) and the spatial grid axis stays "parallel".
    xp = jnp.pad(x_nchw, ((0, 0), (0, 0), (p, Hp - H + p), (0, 0))).astype(jnp.bfloat16)
    x_dy = jnp.stack([xp[:, :, dy:dy + Hp, :] for dy in range(k)], axis=1)
    x_dy = x_dy.reshape(N, k, C1, Hp * W)
    # Per-dy weights with dx folded into the contraction dim -> (k, C2, k*C1), bf16.
    w_k = jnp.transpose(weight, (2, 0, 3, 1)).reshape(k, C2, k * C1).astype(jnp.bfloat16)

    T = R * W
    kernel = functools.partial(_convsqu_kxk_kernel, k=k, p=p, W=W, act=act,
                               approx_recip=(k * k * C1 >= 256))
    out2 = pl.pallas_call(
        kernel,
        out_shape=jax.ShapeDtypeStruct((N, C2, L), out_dtype),
        grid=(N, Ht),
        in_specs=[
            pl.BlockSpec((1, k, C1, T), lambda n, i: (n, 0, 0, i)),
            pl.BlockSpec((k, C2, k * C1), lambda n, i: (0, 0, 0)),
        ],
        out_specs=pl.BlockSpec((1, C2, T), lambda n, i: (n, 0, i)),
        compiler_params=pltpu.CompilerParams(
            dimension_semantics=("parallel", "parallel"),
            vmem_limit_bytes=vmem_limit),
    )(x_dy, w_k)
    return out2.reshape(N, C2, H, W)


# ---------------------------------------------------------------------------
# Pure-JAX reference mirroring the PyTorch forward.
# ---------------------------------------------------------------------------
def _mish_ref(y):
    sp = jnp.where(y > 20.0, y, jnp.log1p(jnp.exp(jnp.minimum(y, 20.0))))
    return y * jnp.tanh(sp)


def convsqu_reference(x_nchw, weight, *, s=1, p=0, g=1, act=True):
    y = lax.conv_general_dilated(
        x_nchw, weight, (s, s), ((p, p), (p, p)),
        dimension_numbers=("NCHW", "OIHW", "NCHW"),
        feature_group_count=g, precision=lax.Precision.HIGHEST)
    return _mish_ref(y) if act else y


if __name__ == "__main__":
    key = jax.random.PRNGKey(0)
    kx, kw1, kw3 = jax.random.split(key, 3)

    N, C1, H, W = 2, 4, 16, 16
    C2 = 4
    x = jax.random.normal(kx, (N, C1, H, W), jnp.float32)

    # Default ConvSqu(c1=4, c2=4): k=1, s=1, p=autopad(1)=0, g=1, act=True (Mish).
    w1 = 0.1 * jax.random.normal(kw1, (C2, C1, 1, 1), jnp.float32)
    out1 = jax.block_until_ready(convsqu_forward(x, w1, k=1, s=1))
    assert out1.shape == (N, C2, H, W) and out1.dtype == jnp.float32
    ref1 = convsqu_reference(x, w1, s=1, p=0)
    err1 = float(jnp.max(jnp.abs(out1 - ref1)))
    # bf16-fed MXU (same numerics as DEFAULT-precision truncation) vs f32 HIGHEST reference.
    if err1 > 1e-2:
        raise AssertionError(f"Pallas ConvSqu (k=1) mismatch vs reference: {err1}")

    # Also exercise the row-tiled odd-k path (k=3, 'same' padding) once.
    w3 = 0.1 * jax.random.normal(kw3, (C2, C1, 3, 3), jnp.float32)
    out3 = jax.block_until_ready(convsqu_forward(x, w3, k=3, s=1))
    ref3 = convsqu_reference(x, w3, s=1, p=1)
    err3 = float(jnp.max(jnp.abs(out3 - ref3)))
    if err3 > 2e-2:  # bf16-level tolerance: k*k*C1 = 36 bf16 products accumulated in f32
        raise AssertionError(f"Pallas ConvSqu (k=3) mismatch vs reference: {err3}")

    print("KERNEL_OK")
</pallas_src>

<mosaic_0001>
module attributes {stable_mosaic.version = 11 : i64} {
  func.func @_convsqu_1x1_kernel(%arg0: i32, %arg1: i32, %arg2: memref<1x4x256xf32, #tpu.memory_space<vmem>>, %arg3: memref<4x4xbf16, #tpu.memory_space<vmem>>, %arg4: memref<1x4x256xf32, #tpu.memory_space<vmem>>) attributes {dimension_semantics = [#tpu.dimension_semantics<parallel>, #tpu.dimension_semantics<parallel>], iteration_bounds = array<i64: 2, 1>, scalar_prefetch = 0 : i64, scratch_operands = 0 : i64, tpu.core_type = #tpu.core_type<tc>, window_params = [{transform_indices = @transform_0, window_bounds = array<i64: 1, 4, 256>}, {pipeline_mode = #tpu.pipeline_mode<synchronous>, transform_indices = @transform_1, window_bounds = array<i64: 4, 4>}, {transform_indices = @transform_2, window_bounds = array<i64: 1, 4, 256>}]} {
    %c0 = arith.constant 0 : index
    %c0_0 = arith.constant 0 : index
    %c0_1 = arith.constant 0 : index
    %0 = vector.load %arg2[%c0, %c0_0, %c0_1] : memref<1x4x256xf32, #tpu.memory_space<vmem>>, vector<1x4x256xf32>
    %1 = vector.shape_cast %0 : vector<1x4x256xf32> to vector<4x256xf32>
    %2 = arith.truncf %1 : vector<4x256xf32> to vector<4x256xbf16>
    %c0_2 = arith.constant 0 : index
    %c0_3 = arith.constant 0 : index
    %3 = vector.load %arg3[%c0_2, %c0_3] : memref<4x4xbf16, #tpu.memory_space<vmem>>, vector<4x4xbf16>
    %cst = arith.constant dense<0.000000e+00> : vector<4x256xf32>
    %4 = tpu.matmul %3, %2, %cst {dimension_numbers = #tpu.dot_dimension_numbers<[1], [0], [0], [1], [0, 0, 1, 1], [], []>} : vector<4x4xbf16>, vector<4x256xbf16>, vector<4x256xf32> -> vector<4x256xf32>
    %cst_4 = arith.constant 2.000000e+01 : f32
    %5 = vector.broadcast %cst_4 : f32 to vector<4x256xf32>
    %6 = arith.minimumf %4, %5 : vector<4x256xf32>
    %7 = math.exp %6 : vector<4x256xf32>
    %cst_5 = arith.constant 2.000000e+00 : f32
    %8 = vector.broadcast %cst_5 : f32 to vector<4x256xf32>
    %9 = arith.addf %7, %8 : vector<4x256xf32>
    %10 = arith.mulf %7, %9 : vector<4x256xf32>
    %cst_6 = arith.constant 2.000000e+00 : f32
    %11 = vector.broadcast %cst_6 : f32 to vector<4x256xf32>
    %12 = arith.addf %10, %11 : vector<4x256xf32>
    %13 = arith.divf %10, %12 : vector<4x256xf32>
    %14 = arith.mulf %4, %13 : vector<4x256xf32>
    %c0_7 = arith.constant 0 : index
    %c0_8 = arith.constant 0 : index
    %c0_9 = arith.constant 0 : index
    %15 = vector.load %arg4[%c0_7, %c0_8, %c0_9] : memref<1x4x256xf32, #tpu.memory_space<vmem>>, vector<1x4x256xf32>
    %16 = vector.shape_cast %15 : vector<1x4x256xf32> to vector<4x256xf32>
    %17 = vector.shape_cast %14 : vector<4x256xf32> to vector<1x4x256xf32>
    tpu.vector_store %arg4[%c0_7, %c0_8, %c0_9], %17 {strides = array<i32>} : memref<1x4x256xf32, #tpu.memory_space<vmem>>, vector<1x4x256xf32>,
    return
  }
  func.func @transform_0(%arg0: i32, %arg1: i32) -> (i32, i32, i32) {
    %c0_i32 = arith.constant 0 : i32
    %c0_i32_0 = arith.constant 0 : i32
    return %arg0, %c0_i32, %arg1 : i32, i32, i32
  }
  func.func @transform_1(%arg0: i32, %arg1: i32) -> (i32, i32) {
    %c0_i32 = arith.constant 0 : i32
    %c0_i32_0 = arith.constant 0 : i32
    %c0_i32_1 = arith.constant 0 : i32
    return %c0_i32, %c0_i32_0 : i32, i32
  }
  func.func @transform_2(%arg0: i32, %arg1: i32) -> (i32, i32, i32) {
    %c0_i32 = arith.constant 0 : i32
    %c0_i32_0 = arith.constant 0 : i32
    return %arg0, %c0_i32, %arg1 : i32, i32, i32
  }
}

</mosaic_0001>

<bundles_post_ra>
// kernel: tpu_custom_call.1
= control target key start
LH: loop header
LB: loop body
LE: loop exit
PB: predicated region body
PF: predicated region fallthrough
CT: control target
= control target key end

     0   :  { %7 = vsyncpa [#allocation3], 0  ;;  %s828_s0 = inlined_call_operand.hbm [shape: f32[2,4,256], index: 0, kind: input, shape index: {}]   ;;  %s829_s1 = inlined_call_operand.hbm [shape: bf16[4,4], index: 1, kind: input, shape index: {}]   ;;  %s830_s2 = inlined_call_operand.hbm [shape: f32[2,4,256], index: 2, kind: output, shape index: {}]  }
   0x1   :  { %9 = vsyncpa [#allocation3 + $0x1], 0 }
   0x2   :  { %10 = vsyncpa [#allocation6], 0 }
   0x3   :  { %11 = vsyncpa [#allocation4], 0 }
   0x4   :  { %13 = vsyncpa [#allocation4 + $0x1], 0  ;;  %s675_s9 = smov 0   ;;  %s677_s10 = smov 0  }
   0x5   :  { %s679_s11 = smov 0   ;;  %s681_s12 = smov 0  }
   0x6   :  { %s683_s13 = smov 0   ;;  %s685_s14 = smov 0  }
   0x7 LB: > { %s409_s15 = sadd.s32 4294967295, %s657_s14   ;;  %s410_s16 = sadd.s32 4294967294, %s657_s14   ;;  %s657_s14 = sphi %s685_s14, %s19_s14   ;;  %s653_s13 = sphi %s683_s13, %s842_s13   ;;  %s649_s12 = sphi %s681_s12, %s841_s12   ;;  %s645_s11 = sphi %s679_s11, %s840_s11   ;;  %s641_s10 = sphi %s677_s10, %s839_s10   ;;  %s637_s9 = sphi %s675_s9, %s838_s9  }
   0x8   : > { %p53_p0 = scmp.ne.s32.totalorder %s641_s10, %s637_s9  ;;  %p709_p1 = scmp.eq.s32.totalorder %s409_s15, 0 }
   0x9   : > { %p713_p2 = scmp.eq.s32.totalorder %s409_s15, 1  ;;  %p106_p3 = scmp.eq.s32.totalorder %s410_s16, 1 }
   0xa   : > { %p719_p4 = por %p709_p1, %p53_p0  ;;  %p411_p5 = scmp.ge.s32.totalorder %s657_s14, 1 }
   0xb   : > { %p724_p6 = por %p106_p3, %p53_p0  ;;  %p113_p7 = scmp.lt.s32.totalorder %s657_s14, 3 }
   0xc   : > { %s125_s23 = sshll.u32 %s829_s1, 4  ;;  %p413_p9 = scmp.ge.s32.totalorder %s657_s14, 2  ;;  %s126_s23 = int_to_ptr.hbm [resolvable:$true] %s125_s23 }
   0xd   : > { %p732_p8 = pnand %p411_p5, %p113_p7  ;;  %s659_s25 = smov [#allocation5]  }
   0xe   : > { %s127_s26 = sshll.u32 %s659_s25, 4  ;;  %s31_s27 = sadd.s32 1, %s653_s13  ;;  %s128_s26 = int_to_ptr.vmem [resolvable:$true] %s127_s26 }
   0xf   : > { %p438_p10 = pneg %p732_p8  ;;  %p33_p12 = scmp.ge.s32.totalorder %s31_s27, 2 }
  0x10   : > { %s40_s28 = sadd.s32 1, %s645_s11  ;;  %p47_p13 = scmp.ne.s32.totalorder %s645_s11, %s641_s10 }
  0x11   : > { %p439_p11 = pnand %p438_p10, %p709_p1  ;;  %p48_p0 = scmp.eq.s32.totalorder %s657_s14, 0 }
  0x12   : > { %s844_s27 = smov (%p33_p12, %s31_s27), 0  ;;  %p754_p5 = por %p713_p2, %p47_p13 }
  0x13   : > { %441 = dma.hbm_to_vmem [thread:$0]  (!%p439_p11), %s126_s23, 32, %s128_s26, [#allocation6]  }
  0x14   : > { %p748_p3 = por %p48_p0, %p47_p13  ;;  %s35_s3 = ssub.s32 %s653_s13, %s844_s27 }
  0x15   : > { %p451_p7 = scmp.lt.s32.totalorder %s657_s14, 2  ;;  %p38_p10 = scmp.eq.s32.totalorder %s35_s3, 0 }
  0x16   : > { %s138_s4 = sand.u32 1, %s645_s11   ;;  %s428_s7 = sshll.u32 %s653_s13, 3 }
  0x17   : > { %s414_s5 = sshll.u32 %s138_s4, 3  ;;  %s149_s16 = scalar_lea.hbm %s828_s0, %s428_s7 }
  0x18   : > { %s763_s6 = scalar_select %p38_p10, %s645_s11, %s40_s28  }
  0x19   : > { %s142_s21 = scalar_lea.vmem [#allocation2], %s414_s5  ;;  %s151_s18 = sshll.u32 %s149_s16, 4  ;;  %s152_s18 = int_to_ptr.hbm [resolvable:$true] %s151_s18 }
  0x1a   : > { %s153_s22 = sshll.u32 %s142_s21, 4  ;;  %p443_p2 = pnand %p451_p7, %p748_p3  ;;  %s154_s22 = int_to_ptr.vmem [resolvable:$true] %s153_s22 }
  0x1b   : > { %s139_s23 = scalar_lea.sflag [#allocation3], %s138_s4  ;;  %162 = sbr.rel (%p732_p8) target bundleno = 221 (0xdd), region = 28 }
  0x1c   : > { %445 = dma.hbm_to_vmem [thread:$0]  (!%p443_p2), %s152_s18, 128, %s154_s22, %s139_s23  }
  0x1d   : > { %s774_s25 = sand.u32 (!%p732_p8), 1, %s641_s10  }
  0x1e   : > { %s418_s26 = sshll.u32 (!%p732_p8), %s774_s25, 3  ;;  %s165_s28 = scalar_lea.sflag (!%p732_p8), [#allocation3], %s774_s25 }
  0x1f   : > { %s168_s3 = scalar_lea.vmem (!%p732_p8), [#allocation2], %s418_s26 }
  0x20   : > { %624 = dma.done.wait (%p719_p4), %s165_s28, 128  }
  0x21   : > { %626 = vsyncadd (%p719_p4), %s165_s28, 4294967168 }
  0x22   : > { %628 = dma.done.wait (%p709_p1), [#allocation6], 32  }
  0x23   : > { %630 = vsyncadd (%p709_p1), [#allocation6], 4294967264  ;;  %v198_v0 = vld [vmem:[%s168_s3] sm:$0xff]  ;;  %vm212_vm0 = vcmask 1041408   ;;  %v207_v7 = vld [vmem:[#allocation5] sm:$0x3] }
  0x24   : > { %200 = vst [vmem:[#allocation1] ss:$2 sm:$0xff] %v198_v0  ;;  %vm208_vm1 = vcmask 31744   ;;  %s429_s17 = sshll.u32 %s649_s12, 3  ;;  %s194_s4 = scalar_lea.vmem [#allocation7], %s418_s26  ;;  %vm292_vm10 = vcmask 1043456  }
  0x25   : > { %s310_s29 = scalar_lea.hbm %s830_s2, %s429_s17  ;;  %s312_s12 = sshll.u32 %s194_s4, 4  ;;  %s313_s12 = int_to_ptr.vmem [resolvable:$true] %s312_s12 }
  0x26   : > { %s314_s5 = sshll.u32 %s310_s29, 4  ;;  %s297_s7 = scalar_lea.sflag [#allocation4], %s774_s25  ;;  %s315_s5 = int_to_ptr.hbm [resolvable:$true] %s314_s5 }
  0x27   : > { %s585_s8 = sshra.s32 %s315_s5, 4  ;;  %s591_s22 = scalar_lea.hbm %s830_s2, 16  ;;  %s586_s8 = int_to_ptr.hbm [resolvable:$true] %s585_s8 }
  0x28   : > { %s587_s15 = scalar_lea.hbm %s586_s8, 8  ;;  %p592_p11 = scmp.lt.s32.totalorder %s586_s8, %s830_s2 }
  0x29   : > { %p588_p1 = scmp.ne.s32.totalorder %s586_s8, %s587_s15  ;;  %p593_p12 = scmp.lt.s32.totalorder %s591_s22, %s587_s15 }
  0x2b   : > { %v201_v1 = vld.sshfl [vmem:[#allocation1] sm:$0xff pattern:$0x75316420]  ;;  %v202_v2 = vld.sshfl [vmem:[#allocation1 + $0x8] sm:$0xff pattern:$0x75316420]  ;;  %p589_p4 = pnand %p588_p1, %p754_p5  ;;  %p594_p13 = por %p593_p12, %p592_p11 }
  0x2c   : > { %v205_v3 = vpack.c.bf16 %v201_v1, %v201_v1  ;;  %v206_v4 = vpack.c.bf16 %v202_v2, %v202_v2 }
  0x2d   : > { %p590_p8 = pneg %p589_p4 }
  0x2e   : > { %v214_v5 = vsel %vm212_vm0, %v205_v3, 0  ;;  %v217_v6 = vsel %vm212_vm0, %v206_v4, 0 }
  0x2f   : > { %226 = vmatpush.bf16.msra.mxu0 %v214_v5  ;;  %239 = vmatpush.bf16.msra.mxu1 %v217_v6  ;;  %p595_p0 = pnand %p594_p13, %p590_p8 }
  0x32   : > { %421 = vmatmul.msk.bf16.vlgmr.msra.gmra.mxu0 %vm208_vm1, %v207_v7  ;;  %422 = vmatmul.msk.bf16.vlgmr.msra.gmra.mxu1 %vm208_vm1, %v207_v7 }
  0xaf   : > { %v228_v8 = vpop.f32.mrf.mxu0  ;;  %v241_v9 = vpop.f32.mrf.mxu1 }
  0xb0   : > { %v245_v10 = vmin.f32 %v228_v8, 20.0  ;;  %v246_v11 = vmin.f32 %v241_v9, 20.0 }
  0xb2   : > { %v247_v12 = vmul.f32 1.442695, %v245_v10  ;;  %v249_v13 = vmul.f32 1.442695, %v246_v11 }
  0xb4   : > { %503 = vpow2.f32 %v247_v12 }
  0xb5   : > { %505 = vpow2.f32 %v249_v13 }
  0xb7   : > { %v230_v14 = vpop.f32.mrf.mxu0  ;;  %v243_v15 = vpop.f32.mrf.mxu1 }
  0xba   : > { %v504_v16 = vpop.eup %503 }
  0xbb   : > { %v506_v17 = vpop.eup %505  ;;  %v251_v18 = vadd.f32 2.0, %v504_v16 }
  0xbc   : > { %v252_v19 = vadd.f32 2.0, %v506_v17 }
  0xbd   : > { %v253_v20 = vmul.f32 %v504_v16, %v251_v18 }
  0xbe   : > { %v254_v21 = vmul.f32 %v506_v17, %v252_v19 }
  0xbf   : > { %v255_v22 = vadd.f32 2.0, %v253_v20 }
  0xc0   : > { %v256_v23 = vadd.f32 2.0, %v254_v21 }
  0xc1   : > { %507 = vrcp.f32 %v255_v22  ;;  %v268_v29 = vand.u32 2147483648, %v255_v22  ;;  %v266_v32 = vand.u32 2147483647, %v255_v22  ;;  %vm262_vm4 = vweird.f32 %v255_v22 }
  0xc2   : > { %509 = vrcp.f32 %v256_v23  ;;  %v283_v33 = vand.u32 2147483648, %v256_v23  ;;  %v281_v35 = vand.u32 2147483647, %v256_v23  ;;  %vm277_vm6 = vweird.f32 %v256_v23 }
  0xc3   : > { %v269_v37 = vor.u32 1.1754944e-38, %v268_v29  ;;  %vm267_vm7 = vcmp.eq.f32.partialorder %v266_v32, 8.507059e+37 }
  0xc4   : > { %v284_v40 = vor.u32 1.1754944e-38, %v283_v33  ;;  %vm282_vm9 = vcmp.eq.f32.partialorder %v281_v35, 8.507059e+37 }
  0xc7   : > { %v508_v24 = vpop.eup %507 }
  0xc8   : > { %v510_v25 = vpop.eup %509  ;;  %v258_v26 = vmul.f32 %v508_v24, %v255_v22  ;;  %vm263_vm2 = vweird.f32 %v508_v24 }
  0xc9   : > { %v273_v27 = vmul.f32 %v510_v25, %v256_v23  ;;  %vm278_vm3 = vweird.f32 %v510_v25  ;;  %vm264_vm5 = vmor %vm262_vm4, %vm263_vm2 }
  0xca   : > { %v259_v28 = vsub.f32 1.0, %v258_v26  ;;  %vm279_vm8 = vmor %vm277_vm6, %vm278_vm3 }
  0xcb   : > { %v274_v30 = vsub.f32 1.0, %v273_v27 }
  0xcc   : > { %v260_v31 = vmul.f32 %v508_v24, %v259_v28 }
  0xcd   : > { %v275_v34 = vmul.f32 %v510_v25, %v274_v30 }
  0xce   : > { %v261_v36 = vadd.f32 %v508_v24, %v260_v31 }
  0xcf   : > { %v276_v38 = vadd.f32 %v510_v25, %v275_v34 }
  0xd0   : > { %v265_v39 = vsel %vm264_vm5, %v508_v24, %v261_v36 }
  0xd1   : > { %v270_v41 = vsel %vm267_vm7, %v269_v37, %v265_v39  ;;  %v280_v42 = vsel %vm279_vm8, %v510_v25, %v276_v38 }
  0xd2   : > { %v285_v43 = vsel %vm282_vm9, %v284_v40, %v280_v42  ;;  %v271_v44 = vmul.f32 %v270_v41, %v253_v20 }
  0xd3   : > { %v286_v45 = vmul.f32 %v285_v43, %v254_v21 }
  0xd4   : > { %v287_v47 = vmul.f32 %v271_v44, %v228_v8 }
  0xd5   : > { %v288_v46 = vmul.f32 %v286_v45, %v241_v9 }
  0xd7   : > { %v291_v48 = vrot.slane %v288_v46, 4 }
  0xd9   : > { %v293_v49 = vsel %vm292_vm10, %v287_v47, %v291_v48 }
  0xda   : > { %295 = vst [vmem:[%s194_s4] sm:$0xff] %v293_v49 }
  0xdb   : > { %598 = shalt.err (!%p595_p0)
}
  0xdc   : > { %436 = dma.vmem_to_hbm [thread:$0]  (%p754_p5), %s313_s12, 128, %s315_s5, %s297_s7  }
  0xdd PF: > { %s326_s25 = sand.u32 1, %s637_s9   ;;  %p447_p3 = pnand %p413_p9, %p724_p6 }
  0xde   : > { %s327_s26 = scalar_lea.sflag [#allocation4], %s326_s25 }
  0xdf   : > { %p448_p7 = pneg %p447_p3 }
  0xe1   : > { %632 = dma.done.wait (%p448_p7), %s327_s26, 128  }
  0xe2   : > { %634 = vsyncadd (%p448_p7), %s327_s26, 4294967168  ;;  %s19_s14 = sadd.s32 1, %s657_s14   ;;  %s838_s9 = smov %s641_s10 }
  0xe3   : > { %p16_p10 = scmp.ge.s32.totalorder %s19_s14, 4   ;;  %s839_s10 = smov %s645_s11 }
  0xe4   : > { %s840_s11 = smov %s763_s6  ;;  %s841_s12 = smov %s653_s13 }
  0xe5   : > { %s842_s13 = smov %s844_s27  ;;  %18 = sbr.rel (!%p16_p10) target bundleno = 7 (0x7), region = 77 }
  0xea   :  { %333 = vsyncpa [#allocation3], 1 }
  0xeb   :  { %335 = vsyncpa [#allocation3 + $0x1], 1 }
  0xec   :  { %336 = vsyncpa [#allocation6], 1 }
  0xed   :  { %337 = vsyncpa [#allocation4], 1 }
  0xee   :  { %339 = vsyncpa [#allocation4 + $0x1], 1 }

</bundles_post_ra>
